<compile_context>
chip_gen: v7x
topology: tpu7x:2x2x1
jax: 0.10.0
libtpu: 0.0.40
codegen_flags: <defaults>
</compile_context>

<pallas_src>
import math
from functools import partial

import jax
import jax.numpy as jnp
from jax.experimental import pallas as pl
from jax.experimental.pallas import tpu as pltpu


def _round_up(n, m):
    return ((n + m - 1) // m) * m


# ------------------------------ kernel ---------------------------------------

def lstm_seq_kernel(x_ref, hx0_ref, cx0_ref, w_ref, b_ref,
                    hy_seq_ref, cy_ref, h_sc, c_sc):
    """One grid step == one LSTM time step.

    W/b are VMEM-resident across the whole grid (constant index_map); the
    recurrent h/c state lives in f32 VMEM scratch.
    """
    t = pl.program_id(0)
    H = cy_ref.shape[-1]

    @pl.when(t == 0)
    def _():
        h_sc[...] = hx0_ref[...]
        c_sc[...] = cx0_ref[...]

    # [x_t (padded to 128 cols) | h_{t-1}] -> (B, Ip + H); both pieces are
    # 128-lane aligned so the concat is free of cross-lane shifts. Downcast
    # only the matmul operand to bf16; state stays f32.
    xh = jnp.concatenate([x_ref[...], h_sc[...]], axis=-1).astype(jnp.bfloat16)

    # Single fused MXU dot (one weight push), f32 accumulation.
    gates = jnp.dot(xh, w_ref[...],
                    preferred_element_type=jnp.float32) + b_ref[...]

    # Gate math in f32 (v5e has no bf16 VPU/EUP). H=128 keeps slices aligned.
    ingate     = jax.nn.sigmoid(gates[:, 0 * H:1 * H])
    forgetgate = jax.nn.sigmoid(gates[:, 1 * H:2 * H])
    cellgate   = jnp.tanh(gates[:, 2 * H:3 * H])
    outgate    = jax.nn.sigmoid(gates[:, 3 * H:4 * H])

    cy = c_sc[...] * forgetgate + ingate * cellgate
    hy = outgate * jnp.tanh(cy)

    c_sc[...] = cy          # carry in f32 (do NOT downcast the cell state)
    h_sc[...] = hy

    hy_seq_ref[...] = hy.astype(hy_seq_ref.dtype)
    cy_ref[...] = cy.astype(cy_ref.dtype)       # constant block: 1 writeback


# --------------------------- parameter packing --------------------------------

def prepare_params(w_x2h, b_x2h, w_h2h, b_h2h, matmul_dtype=jnp.bfloat16):
    """Run ONCE (hoisted out of the hot path).

    w_x2h : (4H, I)  PyTorch nn.Linear layout
    w_h2h : (4H, H)
    Returns W = (Ip + H, 4H) in matmul_dtype (input rows zero-padded to
    Ip = round_up(I, 128) so K is a full MXU pass) and b = (1, 4H) f32.
    """
    four_h, input_size = w_x2h.shape
    hidden_size = w_h2h.shape[1]
    ip = _round_up(input_size, 128)
    wx = jnp.zeros((ip, four_h), jnp.float32).at[:input_size].set(
        w_x2h.astype(jnp.float32).T)
    wh = w_h2h.astype(jnp.float32).T
    w = jnp.concatenate([wx, wh], axis=0).astype(matmul_dtype)    # (Ip+H, 4H)
    b = (b_x2h + b_h2h).reshape(1, -1).astype(jnp.float32)
    return w, b


# ------------------------------ pallas wrapper --------------------------------

@jax.jit
def lstm_sequence(xs, hx, cx, params):
    """Run T LSTM steps in ONE pallas_call (weights resident, state in VMEM).

    xs: (T, B, I) f32, hx/cx: (B, H) f32.
    Returns (hy_seq (T,B,H), cy_final (B,H)).
    """
    w, b = params
    T, B, I = xs.shape
    H = hx.shape[-1]
    Kp = w.shape[0]
    Ip = Kp - H
    four_h = 4 * H

    if I != Ip:
        # One-time static zero-pad of the whole sequence (not a per-step op).
        xs = jnp.pad(xs, ((0, 0), (0, 0), (0, Ip - I)))

    itemsize = jnp.dtype(jnp.float32).itemsize
    cost = pl.CostEstimate(
        flops=2 * T * B * Kp * four_h,
        transcendentals=5 * T * B * H,          # 3 sigmoid + 2 tanh per element
        bytes_accessed=(xs.size * itemsize
                        + w.size * jnp.dtype(w.dtype).itemsize
                        + b.size * itemsize
                        + 2 * B * H * itemsize          # hx, cx in
                        + (T + 1) * B * H * itemsize),  # hy_seq, cy out
    )

    hy_seq, cy = pl.pallas_call(
        lstm_seq_kernel,
        out_shape=(
            jax.ShapeDtypeStruct((T, B, H), cx.dtype),
            jax.ShapeDtypeStruct((B, H), cx.dtype),
        ),
        grid=(T,),
        in_specs=[
            pl.BlockSpec((None, B, Ip), lambda t: (t, 0, 0)),   # x_t, pipelined
            pl.BlockSpec((B, H), lambda t: (0, 0)),             # hx0, resident
            pl.BlockSpec((B, H), lambda t: (0, 0)),             # cx0, resident
            pl.BlockSpec((Kp, four_h), lambda t: (0, 0)),       # W,  resident
            pl.BlockSpec((1, four_h), lambda t: (0, 0)),        # b,  resident
        ],
        out_specs=(
            pl.BlockSpec((None, B, H), lambda t: (t, 0, 0)),    # hy per step
            pl.BlockSpec((B, H), lambda t: (0, 0)),             # final cy
        ),
        scratch_shapes=[
            pltpu.VMEM((B, H), jnp.float32),    # h carry
            pltpu.VMEM((B, H), jnp.float32),    # c carry
        ],
        compiler_params=pltpu.CompilerParams(
            # Recurrence over T -> "arbitrary" (sequential) grid axis.
            dimension_semantics=("arbitrary",),
        ),
        cost_estimate=cost,
    )(xs, hx, cx, w, b)
    return hy_seq, cy


@jax.jit
def lstm_cell(x, hidden, params):
    """Mirrors LSTMCell.forward(x, (hx, cx)): a single step (T=1)."""
    hx, cx = hidden
    x = x.reshape(-1, x.shape[1])              # x.view(-1, x.size(1))
    hy_seq, cy = lstm_sequence(x[None], hx, cx, params)
    return hy_seq[0], cy


# ----------------------------- references -------------------------------------

def reference_lstm_cell_f32(x, hx, cx, w_x2h, b_x2h, w_h2h, b_h2h):
    """Pure-f32 PyTorch-equivalent single step."""
    gates = x @ w_x2h.T + b_x2h + hx @ w_h2h.T + b_h2h
    H = hx.shape[1]
    i = jax.nn.sigmoid(gates[:, 0 * H:1 * H])
    f = jax.nn.sigmoid(gates[:, 1 * H:2 * H])
    g = jnp.tanh(gates[:, 2 * H:3 * H])
    o = jax.nn.sigmoid(gates[:, 3 * H:4 * H])
    cy = cx * f + i * g
    hy = o * jnp.tanh(cy)
    return hy, cy


def reference_sequence_f32(xs, hx, cx, w_x2h, b_x2h, w_h2h, b_h2h):
    def step(carry, x):
        h, c = carry
        h2, c2 = reference_lstm_cell_f32(x, h, c, w_x2h, b_x2h, w_h2h, b_h2h)
        return (h2, c2), h2
    (_, c_final), hs = jax.lax.scan(step, (hx, cx), xs)
    return hs, c_final


def reference_sequence_matched(xs_padded, hx, cx, w, b):
    """Same bf16 matmul operands / f32 accumulation / f32 state as the kernel."""
    H = hx.shape[-1]

    def step(carry, x):
        h, c = carry
        xh = jnp.concatenate([x, h], axis=-1).astype(jnp.bfloat16)
        gates = jnp.dot(xh, w, preferred_element_type=jnp.float32) + b
        i = jax.nn.sigmoid(gates[:, 0 * H:1 * H])
        f = jax.nn.sigmoid(gates[:, 1 * H:2 * H])
        g = jnp.tanh(gates[:, 2 * H:3 * H])
        o = jax.nn.sigmoid(gates[:, 3 * H:4 * H])
        c2 = c * f + i * g
        h2 = o * jnp.tanh(c2)
        return (h2, c2), h2

    (_, c_final), hs = jax.lax.scan(step, (hx, cx), xs_padded)
    return hs, c_final


# --------------------------------- main ---------------------------------------

if __name__ == "__main__":
    B, INPUT_SIZE, HIDDEN_SIZE, T = 8, 64, 128, 8

    key = jax.random.PRNGKey(0)
    kx, kxs, khx, kcx, kw1, kb1, kw2, kb2 = jax.random.split(key, 8)

    # uniform(-std, std), std = 1/sqrt(hidden_size), as in reset_parameters().
    std = 1.0 / math.sqrt(HIDDEN_SIZE)
    w_x2h = jax.random.uniform(kw1, (4 * HIDDEN_SIZE, INPUT_SIZE),
                               jnp.float32, -std, std)
    b_x2h = jax.random.uniform(kb1, (4 * HIDDEN_SIZE,), jnp.float32, -std, std)
    w_h2h = jax.random.uniform(kw2, (4 * HIDDEN_SIZE, HIDDEN_SIZE),
                               jnp.float32, -std, std)
    b_h2h = jax.random.uniform(kb2, (4 * HIDDEN_SIZE,), jnp.float32, -std, std)

    x = jax.random.normal(kx, (B, INPUT_SIZE), jnp.float32)
    hx = jax.random.normal(khx, (B, HIDDEN_SIZE), jnp.float32)
    cx = jax.random.normal(kcx, (B, HIDDEN_SIZE), jnp.float32)

    # One-time parameter packing (transpose + stack + K-pad + bias combine).
    params = prepare_params(w_x2h, b_x2h, w_h2h, b_h2h)
    params = jax.block_until_ready(params)

    # ---- single step: matches the PyTorch module forward --------------------
    hy, cy = lstm_cell(x, (hx, cx), params)
    jax.block_until_ready((hy, cy))

    hy_f, cy_f = reference_lstm_cell_f32(x, hx, cx, w_x2h, b_x2h, w_h2h, b_h2h)
    assert jnp.allclose(hy, hy_f, atol=5e-2, rtol=5e-2)
    assert jnp.allclose(cy, cy_f, atol=5e-2, rtol=5e-2)

    # ---- multi-step: T steps inside one pallas_call --------------------------
    xs = jax.random.normal(kxs, (T, B, INPUT_SIZE), jnp.float32)
    hy_seq, cy_T = lstm_sequence(xs, hx, cx, params)
    jax.block_until_ready((hy_seq, cy_T))

    # Matched-precision reference (same bf16 rounding path as the kernel).
    w_p, b_p = params
    Ip = w_p.shape[0] - HIDDEN_SIZE
    xs_p = jnp.pad(xs, ((0, 0), (0, 0), (0, Ip - INPUT_SIZE)))
    hs_m, c_m = reference_sequence_matched(xs_p, hx, cx, w_p, b_p)
    assert jnp.allclose(hy_seq, hs_m, atol=5e-3, rtol=5e-3)
    assert jnp.allclose(cy_T, c_m, atol=5e-3, rtol=5e-3)

    # Full-f32 PyTorch-equivalent reference (loose: bf16 weight rounding).
    hs_f, c_f = reference_sequence_f32(xs, hx, cx, w_x2h, b_x2h, w_h2h, b_h2h)
    assert jnp.allclose(hy_seq, hs_f, atol=5e-2, rtol=5e-2)
    assert jnp.allclose(cy_T, c_f, atol=5e-2, rtol=5e-2)

    print("KERNEL_OK")
</pallas_src>

<mosaic_0001>
module attributes {stable_mosaic.version = 11 : i64} {
  func.func @lstm_seq_kernel(%arg0: i32, %arg1: memref<1x8x128xf32, #tpu.memory_space<vmem>>, %arg2: memref<8x128xf32, #tpu.memory_space<vmem>>, %arg3: memref<8x128xf32, #tpu.memory_space<vmem>>, %arg4: memref<256x512xbf16, #tpu.memory_space<vmem>>, %arg5: memref<1x512xf32, #tpu.memory_space<vmem>>, %arg6: memref<1x8x128xf32, #tpu.memory_space<vmem>>, %arg7: memref<8x128xf32, #tpu.memory_space<vmem>>, %arg8: memref<8x128xf32, #tpu.memory_space<vmem>>, %arg9: memref<8x128xf32, #tpu.memory_space<vmem>>) attributes {dimension_semantics = [#tpu.dimension_semantics<arbitrary>], iteration_bounds = array<i64: 1>, scalar_prefetch = 0 : i64, scratch_operands = 2 : i64, tpu.core_type = #tpu.core_type<tc>, window_params = [{transform_indices = @transform_0, window_bounds = array<i64: 1, 8, 128>}, {pipeline_mode = #tpu.pipeline_mode<synchronous>, transform_indices = @transform_1, window_bounds = array<i64: 8, 128>}, {pipeline_mode = #tpu.pipeline_mode<synchronous>, transform_indices = @transform_2, window_bounds = array<i64: 8, 128>}, {pipeline_mode = #tpu.pipeline_mode<synchronous>, transform_indices = @transform_3, window_bounds = array<i64: 256, 512>}, {pipeline_mode = #tpu.pipeline_mode<synchronous>, transform_indices = @transform_4, window_bounds = array<i64: 1, 512>}, {transform_indices = @transform_5, window_bounds = array<i64: 1, 8, 128>}, {pipeline_mode = #tpu.pipeline_mode<synchronous>, transform_indices = @transform_6, window_bounds = array<i64: 8, 128>}]} {
    %c0_i32 = arith.constant 0 : i32
    %0 = arith.cmpi eq, %arg0, %c0_i32 : i32
    %1 = arith.extui %0 : i1 to i32
    %c0_i32_0 = arith.constant 0 : i32
    %2 = arith.cmpi ne, %1, %c0_i32_0 : i32
    scf.if %2 {
      %c0_23 = arith.constant 0 : index
      %c0_24 = arith.constant 0 : index
      %45 = vector.load %arg2[%c0_23, %c0_24] : memref<8x128xf32, #tpu.memory_space<vmem>>, vector<8x128xf32>
      %c0_25 = arith.constant 0 : index
      %c0_26 = arith.constant 0 : index
      %46 = vector.load %arg8[%c0_25, %c0_26] : memref<8x128xf32, #tpu.memory_space<vmem>>, vector<8x128xf32>
      tpu.vector_store %arg8[%c0_25, %c0_26], %45 {strides = array<i32>} : memref<8x128xf32, #tpu.memory_space<vmem>>, vector<8x128xf32>,
      %c0_27 = arith.constant 0 : index
      %c0_28 = arith.constant 0 : index
      %47 = vector.load %arg3[%c0_27, %c0_28] : memref<8x128xf32, #tpu.memory_space<vmem>>, vector<8x128xf32>
      %c0_29 = arith.constant 0 : index
      %c0_30 = arith.constant 0 : index
      %48 = vector.load %arg9[%c0_29, %c0_30] : memref<8x128xf32, #tpu.memory_space<vmem>>, vector<8x128xf32>
      tpu.vector_store %arg9[%c0_29, %c0_30], %47 {strides = array<i32>} : memref<8x128xf32, #tpu.memory_space<vmem>>, vector<8x128xf32>,
    } else {
    }
    %c0 = arith.constant 0 : index
    %c0_1 = arith.constant 0 : index
    %c0_2 = arith.constant 0 : index
    %3 = vector.load %arg1[%c0, %c0_1, %c0_2] : memref<1x8x128xf32, #tpu.memory_space<vmem>>, vector<1x8x128xf32>
    %4 = vector.shape_cast %3 : vector<1x8x128xf32> to vector<8x128xf32>
    %c0_3 = arith.constant 0 : index
    %c0_4 = arith.constant 0 : index
    %5 = vector.load %arg8[%c0_3, %c0_4] : memref<8x128xf32, #tpu.memory_space<vmem>>, vector<8x128xf32>
    %6 = tpu.concatenate %4, %5 in 1 : vector<8x128xf32>, vector<8x128xf32> -> vector<8x256xf32>
    %7 = arith.truncf %6 : vector<8x256xf32> to vector<8x256xbf16>
    %c0_5 = arith.constant 0 : index
    %c0_6 = arith.constant 0 : index
    %8 = vector.load %arg4[%c0_5, %c0_6] : memref<256x512xbf16, #tpu.memory_space<vmem>>, vector<256x512xbf16>
    %cst = arith.constant dense<0.000000e+00> : vector<8x512xf32>
    %9 = tpu.matmul %7, %8, %cst {dimension_numbers = #tpu.dot_dimension_numbers<[1], [0], [0], [1], [0, 0, 1, 1], [], []>} : vector<8x256xbf16>, vector<256x512xbf16>, vector<8x512xf32> -> vector<8x512xf32>
    %c0_7 = arith.constant 0 : index
    %c0_8 = arith.constant 0 : index
    %10 = vector.load %arg5[%c0_7, %c0_8] : memref<1x512xf32, #tpu.memory_space<vmem>>, vector<1x512xf32>
    %11 = vector.broadcast %10 : vector<1x512xf32> to vector<8x512xf32>
    %12 = arith.addf %9, %11 : vector<8x512xf32>
    %13 = vector.extract_strided_slice %12 {offsets = [0, 0], sizes = [8, 128], strides = [1, 1]} : vector<8x512xf32> to vector<8x128xf32>
    %14 = arith.negf %13 : vector<8x128xf32>
    %15 = math.exp %14 : vector<8x128xf32>
    %cst_9 = arith.constant 1.000000e+00 : f32
    %16 = vector.broadcast %cst_9 : f32 to vector<8x128xf32>
    %17 = arith.addf %16, %15 : vector<8x128xf32>
    %18 = arith.divf %16, %17 : vector<8x128xf32>
    %19 = vector.extract_strided_slice %12 {offsets = [0, 128], sizes = [8, 128], strides = [1, 1]} : vector<8x512xf32> to vector<8x128xf32>
    %20 = arith.negf %19 : vector<8x128xf32>
    %21 = math.exp %20 : vector<8x128xf32>
    %cst_10 = arith.constant 1.000000e+00 : f32
    %22 = vector.broadcast %cst_10 : f32 to vector<8x128xf32>
    %23 = arith.addf %22, %21 : vector<8x128xf32>
    %24 = arith.divf %22, %23 : vector<8x128xf32>
    %25 = vector.extract_strided_slice %12 {offsets = [0, 256], sizes = [8, 128], strides = [1, 1]} : vector<8x512xf32> to vector<8x128xf32>
    %26 = math.tanh %25 : vector<8x128xf32>
    %27 = vector.extract_strided_slice %12 {offsets = [0, 384], sizes = [8, 128], strides = [1, 1]} : vector<8x512xf32> to vector<8x128xf32>
    %28 = arith.negf %27 : vector<8x128xf32>
    %29 = math.exp %28 : vector<8x128xf32>
    %cst_11 = arith.constant 1.000000e+00 : f32
    %30 = vector.broadcast %cst_11 : f32 to vector<8x128xf32>
    %31 = arith.addf %30, %29 : vector<8x128xf32>
    %32 = arith.divf %30, %31 : vector<8x128xf32>
    %c0_12 = arith.constant 0 : index
    %c0_13 = arith.constant 0 : index
    %33 = vector.load %arg9[%c0_12, %c0_13] : memref<8x128xf32, #tpu.memory_space<vmem>>, vector<8x128xf32>
    %34 = arith.mulf %33, %24 : vector<8x128xf32>
    %35 = arith.mulf %18, %26 : vector<8x128xf32>
    %36 = arith.addf %34, %35 : vector<8x128xf32>
    %37 = math.tanh %36 : vector<8x128xf32>
    %38 = arith.mulf %32, %37 : vector<8x128xf32>
    %c0_14 = arith.constant 0 : index
    %c0_15 = arith.constant 0 : index
    %39 = vector.load %arg9[%c0_14, %c0_15] : memref<8x128xf32, #tpu.memory_space<vmem>>, vector<8x128xf32>
    tpu.vector_store %arg9[%c0_14, %c0_15], %36 {strides = array<i32>} : memref<8x128xf32, #tpu.memory_space<vmem>>, vector<8x128xf32>,
    %c0_16 = arith.constant 0 : index
    %c0_17 = arith.constant 0 : index
    %40 = vector.load %arg8[%c0_16, %c0_17] : memref<8x128xf32, #tpu.memory_space<vmem>>, vector<8x128xf32>
    tpu.vector_store %arg8[%c0_16, %c0_17], %38 {strides = array<i32>} : memref<8x128xf32, #tpu.memory_space<vmem>>, vector<8x128xf32>,
    %c0_18 = arith.constant 0 : index
    %c0_19 = arith.constant 0 : index
    %c0_20 = arith.constant 0 : index
    %41 = vector.load %arg6[%c0_18, %c0_19, %c0_20] : memref<1x8x128xf32, #tpu.memory_space<vmem>>, vector<1x8x128xf32>
    %42 = vector.shape_cast %41 : vector<1x8x128xf32> to vector<8x128xf32>
    %43 = vector.shape_cast %38 : vector<8x128xf32> to vector<1x8x128xf32>
    tpu.vector_store %arg6[%c0_18, %c0_19, %c0_20], %43 {strides = array<i32>} : memref<1x8x128xf32, #tpu.memory_space<vmem>>, vector<1x8x128xf32>,
    %c0_21 = arith.constant 0 : index
    %c0_22 = arith.constant 0 : index
    %44 = vector.load %arg7[%c0_21, %c0_22] : memref<8x128xf32, #tpu.memory_space<vmem>>, vector<8x128xf32>
    tpu.vector_store %arg7[%c0_21, %c0_22], %36 {strides = array<i32>} : memref<8x128xf32, #tpu.memory_space<vmem>>, vector<8x128xf32>,
    return
  }
  func.func @transform_0(%arg0: i32) -> (i32, i32, i32) {
    %c0_i32 = arith.constant 0 : i32
    %c0_i32_0 = arith.constant 0 : i32
    %c0_i32_1 = arith.constant 0 : i32
    return %arg0, %c0_i32, %c0_i32_0 : i32, i32, i32
  }
  func.func @transform_1(%arg0: i32) -> (i32, i32) {
    %c0_i32 = arith.constant 0 : i32
    %c0_i32_0 = arith.constant 0 : i32
    %c0_i32_1 = arith.constant 0 : i32
    return %c0_i32, %c0_i32_0 : i32, i32
  }
  func.func @transform_2(%arg0: i32) -> (i32, i32) {
    %c0_i32 = arith.constant 0 : i32
    %c0_i32_0 = arith.constant 0 : i32
    %c0_i32_1 = arith.constant 0 : i32
    return %c0_i32, %c0_i32_0 : i32, i32
  }
  func.func @transform_3(%arg0: i32) -> (i32, i32) {
    %c0_i32 = arith.constant 0 : i32
    %c0_i32_0 = arith.constant 0 : i32
    %c0_i32_1 = arith.constant 0 : i32
    return %c0_i32, %c0_i32_0 : i32, i32
  }
  func.func @transform_4(%arg0: i32) -> (i32, i32) {
    %c0_i32 = arith.constant 0 : i32
    %c0_i32_0 = arith.constant 0 : i32
    %c0_i32_1 = arith.constant 0 : i32
    return %c0_i32, %c0_i32_0 : i32, i32
  }
  func.func @transform_5(%arg0: i32) -> (i32, i32, i32) {
    %c0_i32 = arith.constant 0 : i32
    %c0_i32_0 = arith.constant 0 : i32
    %c0_i32_1 = arith.constant 0 : i32
    return %arg0, %c0_i32, %c0_i32_0 : i32, i32, i32
  }
  func.func @transform_6(%arg0: i32) -> (i32, i32) {
    %c0_i32 = arith.constant 0 : i32
    %c0_i32_0 = arith.constant 0 : i32
    %c0_i32_1 = arith.constant 0 : i32
    return %c0_i32, %c0_i32_0 : i32, i32
  }
}

</mosaic_0001>

<bundles_post_ra>
// kernel: lstm_sequence.1
= control target key start
LH: loop header
LB: loop body
LE: loop exit
PB: predicated region body
PF: predicated region fallthrough
CT: control target
= control target key end

     0   :  { %12 = vsyncpa [#allocation5], 0  ;;  %s940_s0 = inlined_call_operand.vmem [shape: f32[1,8,128], index: 0, kind: input, shape index: {}]   ;;  %s941_s1 = inlined_call_operand.vmem [shape: f32[8,128], index: 1, kind: input, shape index: {}]   ;;  %s942_s2 = inlined_call_operand.vmem [shape: f32[8,128], index: 2, kind: input, shape index: {}]   ;;  %s943_s3 = inlined_call_operand.hbm [shape: bf16[256,512], index: 3, kind: input, shape index: {}]   ;;  %s944_s4 = inlined_call_operand.vmem [shape: f32[1,512], index: 4, kind: input, shape index: {}]   ;;  %s945_s5 = inlined_call_operand.hbm [shape: f32[1,8,128], index: 5, kind: output, shape index: {0}]   ;;  %s946_s6 = inlined_call_operand.hbm [shape: f32[8,128], index: 6, kind: output, shape index: {1}]  }
   0x1   :  { %13 = vsyncpa [#allocation6], 0 }
   0x2   :  { %14 = vsyncpa [#allocation9], 0  ;;  %s852_s21 = smov [#allocation4]   ;;  %s780_s25 = scalar_lea.hbm %s943_s3, 8192 }
   0x3   :  { %s26_s22 = sshll.u32 %s852_s21, 4  ;;  %p781_p0 = scmp.ne.s32.totalorder %s943_s3, %s780_s25  ;;  %s27_s22 = int_to_ptr.vmem [resolvable:$true] %s26_s22 }
   0x4   :  { %p784_p1 = scmp.lt.u32.totalorder %s780_s25, %s943_s3 }
   0x6   :  { %p786_p2 = pnand %p784_p1, %p781_p0 }
   0x8   :  { %789 = shalt.err (!%p786_p2)
}
   0x9   :  { %s790_s30 = scalar_lea.vmem %s27_s22, 8192  ;;  %p795_p4 = scmp.lt.s32.totalorder %s27_s22, %s27_s22 }
   0xa   :  { %p791_p3 = scmp.ne.s32.totalorder %s27_s22, %s790_s30  ;;  %p796_p5 = scmp.lt.s32.totalorder %s790_s30, %s790_s30 }
   0xc   :  { %p797_p6 = por %p796_p5, %p795_p4 }
   0xe   :  { %p798_p7 = pnand %p797_p6, %p791_p3 }
  0x10   :  { %801 = shalt.err (!%p798_p7)
}
  0x11   :  { %s853_s7 = smov 256   ;;  %s854_s8 = smov 16  }
  0x12   :  { %32 = dma.hbm_to_vmem [thread:$0]  %s943_s3, 8192, %s27_s22, [#allocation5], %s853_s7, %s853_s7, %s854_s8  }
  0x13   :  { %846 = dma.done.wait [#allocation5], 8192  }
  0x14   :  { %847 = vsyncadd [#allocation5], 4294959104  ;;  %v668_v0 = vld [vmem:[#allocation4 + $0x4] ss:$16 sps:$4 sm:$0xff]   ;;  %v670_v1 = vld [vmem:[#allocation4] ss:$16 sps:$4 sm:$0xff]  }
  0x15   :  { %456 = vmatprep.subr.bf16.mxu0 %v668_v0  ;;  %v671_v2 = vld [vmem:[#allocation4 + $0x24] ss:$16 sps:$4 sm:$0xff]   ;;  %v673_v3 = vld [vmem:[#allocation4 + $0x20] ss:$16 sps:$4 sm:$0xff]   ;;  %v679_v5 = vld [vmem:[#allocation4 + $0xc] ss:$16 sps:$4 sm:$0xff]  }
  0x16   :  { %457 = vmatpush1.bf16.msra.mxu0 %v670_v1  ;;  %v674_v4 = vld [vmem:[#allocation4 + $0x44] ss:$16 sps:$4 sm:$0xff]   ;;  %v682_v6 = vld [vmem:[#allocation4 + $0x8] ss:$16 sps:$4 sm:$0xff]   ;;  %v676_v7 = vld [vmem:[#allocation4 + $0x40] ss:$16 sps:$4 sm:$0xff]   ;;  %497 = vmatprep.subr.bf16.mxu1 %v679_v5 }
  0x17   :  { %458 = vmatprep.subr.bf16.mxu0 %v671_v2  ;;  %v677_v8 = vld [vmem:[#allocation4 + $0x64] ss:$16 sps:$4 sm:$0xff]   ;;  %498 = vmatpush1.bf16.msra.mxu1 %v682_v6  ;;  %v685_v9 = vld [vmem:[#allocation4 + $0x2c] ss:$16 sps:$4 sm:$0xff]   ;;  %v688_v10 = vld [vmem:[#allocation4 + $0x28] ss:$16 sps:$4 sm:$0xff]  }
  0x18   :  { %499 = vmatprep.subr.bf16.mxu1 %v685_v9  ;;  %v681_v11 = vld [vmem:[#allocation4 + $0x60] ss:$16 sps:$4 sm:$0xff]   ;;  %v683_v12 = vld [vmem:[#allocation4 + $0x84] ss:$16 sps:$4 sm:$0xff]   ;;  %v691_v13 = vld [vmem:[#allocation4 + $0x4c] ss:$16 sps:$4 sm:$0xff]  }
  0x19   :  { %v694_v14 = vld [vmem:[#allocation4 + $0x48] ss:$16 sps:$4 sm:$0xff]   ;;  %v697_v15 = vld [vmem:[#allocation4 + $0x6c] ss:$16 sps:$4 sm:$0xff]   ;;  %v687_v16 = vld [vmem:[#allocation4 + $0x80] ss:$16 sps:$4 sm:$0xff]  }
  0x1a   :  { %459 = vmatpush1.bf16.msra.mxu0 %v673_v3  ;;  %v689_v17 = vld [vmem:[#allocation4 + $0xa4] ss:$16 sps:$4 sm:$0xff]   ;;  %v700_v18 = vld [vmem:[#allocation4 + $0x68] ss:$16 sps:$4 sm:$0xff]   ;;  %v703_v19 = vld [vmem:[#allocation4 + $0x8c] ss:$16 sps:$4 sm:$0xff]  }
  0x1b   :  { %460 = vmatprep.subr.bf16.mxu0 %v674_v4  ;;  %500 = vmatpush1.bf16.msra.mxu1 %v688_v10  ;;  %v693_v20 = vld [vmem:[#allocation4 + $0xa0] ss:$16 sps:$4 sm:$0xff]   ;;  %v695_v21 = vld [vmem:[#allocation4 + $0xc4] ss:$16 sps:$4 sm:$0xff]   ;;  %v706_v22 = vld [vmem:[#allocation4 + $0x88] ss:$16 sps:$4 sm:$0xff]   ;;  %v116_v4 = vlaneseq }
  0x1c   :  { %501 = vmatprep.subr.bf16.mxu1 %v691_v13  ;;  %v709_v23 = vld [vmem:[#allocation4 + $0xac] ss:$16 sps:$4 sm:$0xff]   ;;  %v699_v24 = vld [vmem:[#allocation4 + $0xc0] ss:$16 sps:$4 sm:$0xff]   ;;  %v701_v25 = vld [vmem:[#allocation4 + $0xe4] ss:$16 sps:$4 sm:$0xff]  }
  0x1d   :  { %v712_v26 = vld [vmem:[#allocation4 + $0xa8] ss:$16 sps:$4 sm:$0xff]   ;;  %v715_v27 = vld [vmem:[#allocation4 + $0xcc] ss:$16 sps:$4 sm:$0xff]   ;;  %v705_v28 = vld [vmem:[#allocation4 + $0xe0] ss:$16 sps:$4 sm:$0xff]  }
  0x1e   :  { %461 = vmatpush1.bf16.msra.mxu0 %v676_v7  ;;  %v707_v29 = vld [vmem:[#allocation4 + $0x104] ss:$16 sps:$4 sm:$0xff]   ;;  %v718_v30 = vld [vmem:[#allocation4 + $0xc8] ss:$16 sps:$4 sm:$0xff]   ;;  %v721_v31 = vld [vmem:[#allocation4 + $0xec] ss:$16 sps:$4 sm:$0xff]  }
  0x1f   :  { %462 = vmatprep.subr.bf16.mxu0 %v677_v8  ;;  %502 = vmatpush1.bf16.msra.mxu1 %v694_v14  ;;  %v711_v32 = vld [vmem:[#allocation4 + $0x100] ss:$16 sps:$4 sm:$0xff]   ;;  %v713_v33 = vld [vmem:[#allocation4 + $0x124] ss:$16 sps:$4 sm:$0xff]   ;;  %v724_v34 = vld [vmem:[#allocation4 + $0xe8] ss:$16 sps:$4 sm:$0xff]  }
  0x20   :  { %503 = vmatprep.subr.bf16.mxu1 %v697_v15  ;;  %v727_v35 = vld [vmem:[#allocation4 + $0x10c] ss:$16 sps:$4 sm:$0xff]   ;;  %v717_v36 = vld [vmem:[#allocation4 + $0x120] ss:$16 sps:$4 sm:$0xff]   ;;  %v719_v37 = vld [vmem:[#allocation4 + $0x144] ss:$16 sps:$4 sm:$0xff]  }
  0x21   :  { %v730_v38 = vld [vmem:[#allocation4 + $0x108] ss:$16 sps:$4 sm:$0xff]   ;;  %v733_v39 = vld [vmem:[#allocation4 + $0x12c] ss:$16 sps:$4 sm:$0xff]   ;;  %v42_v40 = vld [vmem:[%s941_s1] sm:$0xff]  ;;  %v117_v5 = vshrl.u32 %v116_v4, 7 }
  0x22   :  { %463 = vmatpush1.bf16.msra.mxu0 %v681_v11  ;;  %v723_v41 = vld [vmem:[#allocation4 + $0x140] ss:$16 sps:$4 sm:$0xff]   ;;  %v49_v42 = vpack.c.bf16 %v42_v40, %v42_v40  ;;  %v725_v43 = vld [vmem:[#allocation4 + $0x164] ss:$16 sps:$4 sm:$0xff]   ;;  %v736_v44 = vld [vmem:[#allocation4 + $0x128] ss:$16 sps:$4 sm:$0xff]  }
  0x23   :  { %464 = vmatprep.subr.bf16.mxu0 %v683_v12  ;;  %504 = vmatpush1.bf16.msra.mxu1 %v700_v18  ;;  %v739_v45 = vld [vmem:[#allocation4 + $0x14c] ss:$16 sps:$4 sm:$0xff]   ;;  %v729_v46 = vld [vmem:[#allocation4 + $0x160] ss:$16 sps:$4 sm:$0xff]   ;;  %v731_v47 = vld [vmem:[#allocation4 + $0x184] ss:$16 sps:$4 sm:$0xff]  }
  0x24   :  { %505 = vmatprep.subr.bf16.mxu1 %v703_v19  ;;  %488 = vmatprep.mubr.bf16.mxu0 %v49_v42  ;;  %v742_v48 = vld [vmem:[#allocation4 + $0x148] ss:$16 sps:$4 sm:$0xff]   ;;  %v745_v49 = vld [vmem:[#allocation4 + $0x16c] ss:$16 sps:$4 sm:$0xff]   ;;  %v735_v50 = vld [vmem:[#allocation4 + $0x180] ss:$16 sps:$4 sm:$0xff]  }
  0x25   :  { %529 = vmatprep.mubr.bf16.mxu1 %v49_v42  ;;  %v737_v51 = vld [vmem:[#allocation4 + $0x1a4] ss:$16 sps:$4 sm:$0xff]   ;;  %v748_v52 = vld [vmem:[#allocation4 + $0x168] ss:$16 sps:$4 sm:$0xff]   ;;  %v751_v53 = vld [vmem:[#allocation4 + $0x18c] ss:$16 sps:$4 sm:$0xff]  }
  0x26   :  { %465 = vmatpush1.bf16.msra.mxu0 %v687_v16  ;;  %v741_v54 = vld [vmem:[#allocation4 + $0x1a0] ss:$16 sps:$4 sm:$0xff]   ;;  %v743_v55 = vld [vmem:[#allocation4 + $0x1c4] ss:$16 sps:$4 sm:$0xff]   ;;  %v754_v56 = vld [vmem:[#allocation4 + $0x188] ss:$16 sps:$4 sm:$0xff]  }
  0x27   :  { %466 = vmatprep.subr.bf16.mxu0 %v689_v17  ;;  %506 = vmatpush1.bf16.msra.mxu1 %v706_v22  ;;  %v755_v57 = vld [vmem:[#allocation4 + $0x1ac] ss:$16 sps:$4 sm:$0xff]   ;;  %v747_v58 = vld [vmem:[#allocation4 + $0x1c0] ss:$16 sps:$4 sm:$0xff]   ;;  %v749_v59 = vld [vmem:[#allocation4 + $0x1e4] ss:$16 sps:$4 sm:$0xff]  }
  0x28   :  { %507 = vmatprep.subr.bf16.mxu1 %v709_v23  ;;  %v757_v60 = vld [vmem:[#allocation4 + $0x1a8] ss:$16 sps:$4 sm:$0xff]   ;;  %v758_v61 = vld [vmem:[#allocation4 + $0x1cc] ss:$16 sps:$4 sm:$0xff]   ;;  %v753_v62 = vld [vmem:[#allocation4 + $0x1e0] ss:$16 sps:$4 sm:$0xff]  }
  0x29   :  { %v46_v63 = vld [vmem:[%s940_s0] sm:$0xff]  ;;  %v760_v0 = vld [vmem:[#allocation4 + $0x1c8] ss:$16 sps:$4 sm:$0xff]   ;;  %v761_v1 = vld [vmem:[#allocation4 + $0x1ec] ss:$16 sps:$4 sm:$0xff]   ;;  %v118_v6 = vsub.s32 0, %v117_v5 }
  0x2a   :  { %467 = vmatpush1.bf16.msra.mxu0 %v693_v20  ;;  %v48_v2 = vpack.c.bf16 %v46_v63, %v46_v63  ;;  %v763_v3 = vld [vmem:[#allocation4 + $0x1e8] ss:$16 sps:$4 sm:$0xff]   ;;  %v114_v7 = vld [vmem:[%s944_s4] sm:$0xf]  ;;  %v122_v8 = vsub.s32 1, %v117_v5  ;;  %v130_v11 = vsub.s32 3, %v117_v5 }
  0x2b   :  { %468 = vmatprep.subr.bf16.mxu0 %v695_v21  ;;  %508 = vmatpush1.bf16.msra.mxu1 %v712_v26  ;;  %v119_v9 = vrot.slane %v114_v7, %v118_v6  ;;  %v126_v21 = vsub.s32 2, %v117_v5  ;;  %s855_s15 = smov [#allocation8]  }
  0x2c   :  { %509 = vmatprep.subr.bf16.mxu1 %v715_v27  ;;  %v123_v10 = vrot.slane %v114_v7, %v122_v8  ;;  %v131_v19 = vrot.slane %v114_v7, %v130_v11  ;;  %s583_s16 = sshll.u32 %s855_s15, 4  ;;  %s584_s16 = int_to_ptr.vmem [resolvable:$true] %s583_s16 }
  0x2d   :  { %v127_v26 = vrot.slane %v114_v7, %v126_v21  ;;  %s802_s17 = scalar_lea.vmem %s584_s16, 128  ;;  %p807_p9 = scmp.lt.s32.totalorder %s584_s16, %s584_s16 }
  0x2e   :  { %469 = vmatpush1.bf16.msra.mxu0 %v699_v24  ;;  %p803_p8 = scmp.ne.s32.totalorder %s584_s16, %s802_s17  ;;  %p808_p10 = scmp.lt.s32.totalorder %s802_s17, %s802_s17 }
  0x2f   :  { %470 = vmatprep.subr.bf16.mxu0 %v701_v25  ;;  %510 = vmatpush1.bf16.msra.mxu1 %v718_v30 }
  0x30   :  { %511 = vmatprep.subr.bf16.mxu1 %v721_v31  ;;  %p809_p11 = por %p808_p10, %p807_p9 }
  0x32   :  { %471 = vmatpush1.bf16.msra.mxu0 %v705_v28  ;;  %p810_p12 = pnand %p809_p11, %p803_p8 }
  0x33   :  { %472 = vmatprep.subr.bf16.mxu0 %v707_v29  ;;  %512 = vmatpush1.bf16.msra.mxu1 %v724_v34 }
  0x34   :  { %513 = vmatprep.subr.bf16.mxu1 %v727_v35 }
  0x36   :  { %473 = vmatpush1.bf16.msra.mxu0 %v711_v32 }
  0x37   :  { %474 = vmatprep.subr.bf16.mxu0 %v713_v33  ;;  %514 = vmatpush1.bf16.msra.mxu1 %v730_v38 }
  0x38   :  { %515 = vmatprep.subr.bf16.mxu1 %v733_v39 }
  0x3a   :  { %475 = vmatpush1.bf16.msra.mxu0 %v717_v36  ;;  %v44_v36 = vld [vmem:[%s942_s2] sm:$0xff] }
  0x3b   :  { %476 = vmatprep.subr.bf16.mxu0 %v719_v37  ;;  %516 = vmatpush1.bf16.msra.mxu1 %v736_v44 }
  0x3c   :  { %517 = vmatprep.subr.bf16.mxu1 %v739_v45 }
  0x3e   :  { %477 = vmatpush1.bf16.msra.mxu0 %v723_v41 }
  0x3f   :  { %478 = vmatprep.subr.bf16.mxu0 %v725_v43  ;;  %518 = vmatpush1.bf16.msra.mxu1 %v742_v48 }
  0x40   :  { %519 = vmatprep.subr.bf16.mxu1 %v745_v49 }
  0x42   :  { %479 = vmatpush1.bf16.msra.mxu0 %v729_v46 }
  0x43   :  { %480 = vmatprep.subr.bf16.mxu0 %v731_v47  ;;  %520 = vmatpush1.bf16.msra.mxu1 %v748_v52 }
  0x44   :  { %521 = vmatprep.subr.bf16.mxu1 %v751_v53 }
  0x46   :  { %481 = vmatpush1.bf16.msra.mxu0 %v735_v50 }
  0x47   :  { %482 = vmatprep.subr.bf16.mxu0 %v737_v51  ;;  %522 = vmatpush1.bf16.msra.mxu1 %v754_v56 }
  0x48   :  { %523 = vmatprep.subr.bf16.mxu1 %v755_v57 }
  0x4a   :  { %483 = vmatpush1.bf16.msra.mxu0 %v741_v54 }
  0x4b   :  { %484 = vmatprep.subr.bf16.mxu0 %v743_v55  ;;  %524 = vmatpush1.bf16.msra.mxu1 %v757_v60 }
  0x4c   :  { %525 = vmatprep.subr.bf16.mxu1 %v758_v61 }
  0x4e   :  { %485 = vmatpush1.bf16.msra.mxu0 %v747_v58 }
  0x4f   :  { %486 = vmatprep.subr.bf16.mxu0 %v749_v59  ;;  %526 = vmatpush1.bf16.msra.mxu1 %v760_v0 }
  0x50   :  { %527 = vmatprep.subr.bf16.mxu1 %v761_v1 }
  0x52   :  { %487 = vmatpush1.bf16.msra.mxu0 %v753_v62 }
  0x53   :  { %528 = vmatpush1.bf16.msra.mxu1 %v763_v3 }
  0x55   :  { %489 = vmatmul.mubr.bf16.vlgmr.msra.gmra.mrb[0].mxu0 %v48_v2 }
  0x56   :  { %530 = vmatmul.mubr.bf16.vlgmr.msra.gmra.mrb[0].mxu1 %v48_v2 }
 0x128   :  { %v490_v12 = vpop.f32.mrb[0].mxu0 }
 0x129   :  { %v491_v13 = vadd.f32 %v490_v12, %v119_v9  ;;  %v492_v14 = vpop.f32.mrb[1].mxu0  ;;  %v531_v22 = vpop.f32.mrb[0].mxu1 }
 0x12a   :  { %v493_v15 = vadd.f32 %v492_v14, %v123_v10  ;;  %v494_v16 = vpop.f32.mrb[2].mxu0  ;;  %v533_v23 = vpop.f32.mrb[1].mxu1  ;;  %v532_v29 = vadd.f32 %v531_v22, %v127_v26 }
 0x12b   :  { %v660_v17 = vmul.f32 -1.442695, %v491_v13  ;;  %v495_v18 = vpop.f32.mrb[3].mxu0  ;;  %v534_v24 = vadd.f32 %v533_v23, %v131_v19  ;;  %v535_v25 = vpop.f32.mrb[2].mxu1 }
 0x12c   :  { %v661_v20 = vmul.f32 -1.442695, %v493_v15  ;;  %v536_v27 = vpop.f32.mrb[3].mxu1 }
 0x12d   :  { %764 = vpow2.f32 %v660_v17  ;;  %v662_v28 = vmul.f32 -1.442695, %v534_v24 }
 0x12e   :  { %766 = vpow2.f32 %v661_v20 }
 0x12f   :  { %768 = vpow2.f32 %v662_v28 }
 0x130   :  { %770 = vtanh.f32 %v532_v29 }
 0x137   :  { %v765_v30 = vpop.eup %764 }
 0x138   :  { %v767_v31 = vpop.eup %766  ;;  %v541_v32 = vadd.f32 1.0, %v765_v30 }
 0x139   :  { %v547_v33 = vadd.f32 1.0, %v767_v31  ;;  %v769_v34 = vpop.eup %768 }
 0x13a   :  { %772 = vrcp.f32 %v541_v32  ;;  %v771_v35 = vpop.eup %770  ;;  %v554_v38 = vadd.f32 1.0, %v769_v34 }
 0x13b   :  { %774 = vrcp.f32 %v547_v33 }
 0x13c   :  { %776 = vrcp.f32 %v554_v38 }
 0x144   :  { %v773_v37 = vpop.eup %772 }
 0x145   :  { %v775_v39 = vpop.eup %774  ;;  %v559_v40 = vmul.f32 %v773_v37, %v771_v35 }
 0x146   :  { %v558_v41 = vmul.f32 %v775_v39, %v44_v36 }
 0x148   :  { %v560_v42 = vadd.f32 %v559_v40, %v558_v41 }
 0x14a   :  { %566 = vst [vmem:[#allocation8] sm:$0xff] %v560_v42  ;;  %778 = vtanh.f32 %v560_v42 }
 0x14b   :  { %813 = shalt.err (!%p810_p12)
}
 0x14c   :  { %s814_s19 = scalar_lea.hbm %s946_s6, 128 }
 0x14d   :  { %p815_p13 = scmp.ne.s32.totalorder %s946_s6, %s814_s19  ;;  %p818_p0 = scmp.lt.u32.totalorder %s814_s19, %s946_s6 }
 0x14f   :  { %p820_p1 = pnand %p818_p0, %p815_p13 }
 0x151   :  { %823 = shalt.err (!%p820_p1)
}
 0x152   :  { %586 = dma.vmem_to_hbm [thread:$0]  %s584_s16, 128, %s946_s6, [#allocation9]   ;;  %v777_v43 = vpop.eup %776 }
 0x153   :  { %s856_s26 = smov [#allocation7]  }
 0x154   :  { %s573_s27 = sshll.u32 %s856_s26, 4  ;;  %v779_v44 = vpop.eup %778  ;;  %s574_s27 = int_to_ptr.vmem [resolvable:$true] %s573_s27 }
 0x155   :  { %v562_v45 = vmul.f32 %v779_v44, %v777_v43  ;;  %s824_s28 = scalar_lea.vmem %s574_s27, 128  ;;  %p829_p3 = scmp.lt.s32.totalorder %s574_s27, %s574_s27 }
 0x156   :  { %p825_p2 = scmp.ne.s32.totalorder %s574_s27, %s824_s28  ;;  %p830_p4 = scmp.lt.s32.totalorder %s824_s28, %s824_s28 }
 0x157   :  { %565 = vst [vmem:[#allocation7] sm:$0xff] %v562_v45 }
 0x158   :  { %p831_p5 = por %p830_p4, %p829_p3 }
 0x15a   :  { %p832_p6 = pnand %p831_p5, %p825_p2 }
 0x15c   :  { %835 = shalt.err (!%p832_p6)
}
 0x15d   :  { %s836_s7 = scalar_lea.hbm %s945_s5, 128 }
 0x15e   :  { %p837_p7 = scmp.ne.s32.totalorder %s945_s5, %s836_s7  ;;  %p840_p8 = scmp.lt.u32.totalorder %s836_s7, %s945_s5 }
 0x160   :  { %p842_p9 = pnand %p840_p8, %p837_p7 }
 0x162   :  { %845 = shalt.err (!%p842_p9)
}
 0x163   :  { %576 = dma.vmem_to_hbm [thread:$0]  %s574_s27, 128, %s945_s5, [#allocation6]  }
 0x164   :  { %848 = dma.done.wait [#allocation6], 128  }
 0x165   :  { %849 = vsyncadd [#allocation6], 4294967168 }
 0x166   :  { %850 = dma.done.wait [#allocation9], 128  }
 0x167   :  { %851 = vsyncadd [#allocation9], 4294967168 }
 0x168   :  { %593 = vsyncpa [#allocation5], 1 }
 0x169   :  { %594 = vsyncpa [#allocation6], 1 }
 0x16a   :  { %595 = vsyncpa [#allocation9], 1 }

</bundles_post_ra>
